<compile_context>
chip_gen: v6e
topology: v6e:2x2x1
jax: 0.10.0
libtpu: 0.0.40
codegen_flags: <defaults>
</compile_context>

<pallas_src>
import math

import jax
import jax.numpy as jnp
from jax.experimental import pallas as pl
from jax.experimental.pallas import tpu as pltpu


# ----------------------------------------------------------------------------
# Kernel: tile-wise copy (only used by the materialized-copy path).
# ----------------------------------------------------------------------------
def _copy_kernel(src_ref, out_ref):
    out_ref[...] = src_ref[...]


# ----------------------------------------------------------------------------
# Tiling heuristics (pure Python, trace-time only).
# ----------------------------------------------------------------------------
def _pick_lane_width(total_elems):
    """Largest lane-dense width (multiple of 128) dividing the element count,
    preferring widths that leave >= 8 rows so sublanes tile cleanly."""
    candidates = (4096, 2048, 1024, 512, 256, 128)
    for lane in candidates:
        if total_elems % lane == 0 and total_elems // lane >= 8:
            return lane
    for lane in candidates:
        if total_elems % lane == 0:
            return lane
    return None


def _pick_row_block(rows, lane, itemsize, target_bytes=2 * 1024 * 1024):
    """Largest multiple-of-8 divisor of `rows` giving ~target_bytes per tile."""
    if rows % 8 != 0:
        # Block must equal the full dim if it is not a multiple of 8.
        return rows
    target_rows = max(8, target_bytes // (lane * itemsize))
    best = 8
    d = 8
    limit = min(rows, target_rows)
    while d <= limit:
        if rows % d == 0:
            best = d
        d += 8
    # Prefer >= 2 grid steps so v7x's two TensorCores both get work.
    if best == rows and rows >= 16 and (rows // 2) % 8 == 0:
        best = rows // 2
    return best


# ----------------------------------------------------------------------------
# Module-equivalent forward passes.
# ----------------------------------------------------------------------------
def no_attention_layer(query_features, reference_features):
    """Exact equivalent of NoAttentionLayer.forward: identity on reference_features.

    No kernel is launched — an identity should cost ~0.  Callers that want
    buffer reuse across a jit boundary should use donate_argnums at that level.
    """
    del query_features  # unused, exactly like the PyTorch module
    return reference_features


def no_attention_layer_pallas(query_features, reference_features):
    """Materialized-copy variant: returns a fresh buffer equal to
    reference_features, produced by a lane-dense, large-tile Pallas copy."""
    del query_features  # unused, exactly like the PyTorch module
    x = reference_features

    total = math.prod(x.shape)
    lane = _pick_lane_width(total)
    if lane is None:
        # Element count not a multiple of 128: a masked Pallas copy would waste
        # lane width — the zero-cost identity is strictly better and exact.
        return x

    rows = total // lane
    itemsize = jnp.dtype(x.dtype).itemsize
    row_block = _pick_row_block(rows, lane, itemsize)
    grid = (pl.cdiv(rows, row_block),)

    x2d = x.reshape(rows, lane)

    out2d = pl.pallas_call(
        _copy_kernel,
        out_shape=jax.ShapeDtypeStruct((rows, lane), x.dtype),
        grid_spec=pltpu.PrefetchScalarGridSpec(
            num_scalar_prefetch=0,
            grid=grid,
            in_specs=[pl.BlockSpec((row_block, lane), lambda i: (i, 0))],
            out_specs=pl.BlockSpec((row_block, lane), lambda i: (i, 0)),
        ),
        compiler_params=pltpu.CompilerParams(
            dimension_semantics=("parallel",),
        ),
    )(x2d)

    return out2d.reshape(x.shape)


# ----------------------------------------------------------------------------
# Demo / self-test.
# ----------------------------------------------------------------------------
if __name__ == "__main__":
    key = jax.random.PRNGKey(0)
    kq, kr = jax.random.split(key)

    # Small NCHW feature maps: batch=2, channels=4, spatial=16x16.
    query_features = jax.random.normal(kq, (2, 4, 16, 16), dtype=jnp.float32)
    reference_features = jax.random.normal(kr, (2, 4, 16, 16), dtype=jnp.float32)

    # 1) True module semantics: zero-cost identity (no kernel launched).
    out_fast = jax.block_until_ready(
        no_attention_layer(query_features, reference_features)
    )
    assert out_fast.shape == reference_features.shape
    assert out_fast.dtype == reference_features.dtype
    assert bool(jnp.array_equal(out_fast, reference_features))

    # 2) Pallas materialized-copy path (lane-dense tiles, exercised on TPU).
    out_copy = jax.block_until_ready(
        no_attention_layer_pallas(query_features, reference_features)
    )
    assert out_copy.shape == reference_features.shape
    assert out_copy.dtype == reference_features.dtype
    assert bool(jnp.array_equal(out_copy, reference_features))

    print("KERNEL_OK")
</pallas_src>

<mosaic_0001>
module attributes {stable_mosaic.version = 11 : i64} {
  func.func @_copy_kernel(%arg0: i32, %arg1: memref<8x256xf32, #tpu.memory_space<vmem>>, %arg2: memref<8x256xf32, #tpu.memory_space<vmem>>) attributes {dimension_semantics = [#tpu.dimension_semantics<parallel>], iteration_bounds = array<i64: 1>, scalar_prefetch = 0 : i64, scratch_operands = 0 : i64, tpu.core_type = #tpu.core_type<tc>, window_params = [{transform_indices = @transform_0, window_bounds = array<i64: 8, 256>}, {transform_indices = @transform_1, window_bounds = array<i64: 8, 256>}]} {
    %c0 = arith.constant 0 : index
    %c0_0 = arith.constant 0 : index
    %0 = vector.load %arg1[%c0, %c0_0] : memref<8x256xf32, #tpu.memory_space<vmem>>, vector<8x256xf32>
    %c0_1 = arith.constant 0 : index
    %c0_2 = arith.constant 0 : index
    %1 = vector.load %arg2[%c0_1, %c0_2] : memref<8x256xf32, #tpu.memory_space<vmem>>, vector<8x256xf32>
    tpu.vector_store %arg2[%c0_1, %c0_2], %0 {strides = array<i32>} : memref<8x256xf32, #tpu.memory_space<vmem>>, vector<8x256xf32>,
    return
  }
  func.func @transform_0(%arg0: i32) -> (i32, i32) {
    %c0_i32 = arith.constant 0 : i32
    %c0_i32_0 = arith.constant 0 : i32
    return %arg0, %c0_i32 : i32, i32
  }
  func.func @transform_1(%arg0: i32) -> (i32, i32) {
    %c0_i32 = arith.constant 0 : i32
    %c0_i32_0 = arith.constant 0 : i32
    return %arg0, %c0_i32 : i32, i32
  }
}

</mosaic_0001>

<bundles_post_ra>
// kernel: tpu_custom_call.1
= control target key start
LH: loop header
LB: loop body
LE: loop exit
PB: predicated region body
PF: predicated region fallthrough
CT: control target
= control target key end

     0   :  { %6 = vsyncpa [#allocation3], 0  ;;  %s104_s0 = inlined_call_operand.hbm [shape: f32[8,256], index: 0, kind: input, shape index: {}]   ;;  %s105_s1 = inlined_call_operand.hbm [shape: f32[8,256], index: 1, kind: output, shape index: {}]  }
   0x1   :  { %7 = vsyncpa [#allocation4], 0  ;;  %s86_s6 = smov [#allocation2]  }
   0x2   :  { %s14_s7 = sshll.u32 %s86_s6, 4  ;;  %s15_s7 = int_to_ptr.vmem [resolvable:$true] %s14_s7 }
   0x3   :  { %s50_s8 = scalar_lea.vmem %s15_s7, 256  ;;  %p55_p1 = scmp.lt.s32.totalorder %s15_s7, %s15_s7 }
   0x4   :  { %p51_p0 = scmp.ne.s32.totalorder %s15_s7, %s50_s8  ;;  %p56_p2 = scmp.lt.s32.totalorder %s50_s8, %s50_s8 }
   0x6   :  { %p57_p3 = por %p56_p2, %p55_p1 }
   0x8   :  { %p58_p4 = pnand %p57_p3, %p51_p0 }
   0xa   :  { %61 = shalt.err (!%p58_p4)
}
   0xb   :  { %17 = dma.hbm_to_vmem [thread:$0]  %s104_s0, 256, %s15_s7, [#allocation3]  }
   0xc   :  { %82 = dma.done.wait [#allocation3], 256  }
   0xd   :  { %83 = vsyncadd [#allocation3], 4294967040  ;;  %s87_s11 = smov [#allocation5]   ;;  %v21_v0 = vld [vmem:[#allocation2] sm:$0xff]  ;;  %v22_v1 = vld [vmem:[#allocation2 + $0x8] sm:$0xff] }
   0xe   :  { %s31_s12 = sshll.u32 %s87_s11, 4  ;;  %23 = vst [vmem:[#allocation5] sm:$0xff] %v21_v0  ;;  %24 = vst [vmem:[#allocation5 + $0x8] sm:$0xff] %v22_v1  ;;  %s32_s12 = int_to_ptr.vmem [resolvable:$true] %s31_s12 }
   0xf   :  { %s62_s13 = scalar_lea.vmem %s32_s12, 256  ;;  %p67_p6 = scmp.lt.s32.totalorder %s32_s12, %s32_s12 }
  0x10   :  { %p63_p5 = scmp.ne.s32.totalorder %s32_s12, %s62_s13  ;;  %p68_p7 = scmp.lt.s32.totalorder %s62_s13, %s62_s13 }
  0x12   :  { %p69_p8 = por %p68_p7, %p67_p6 }
  0x14   :  { %p70_p9 = pnand %p69_p8, %p63_p5 }
  0x16   :  { %73 = shalt.err (!%p70_p9)
}
  0x17   :  { %34 = dma.vmem_to_hbm [thread:$0]  %s32_s12, 256, %s105_s1, [#allocation4]  }
  0x18   :  { %84 = dma.done.wait [#allocation4], 256  }
  0x19   :  { %85 = vsyncadd [#allocation4], 4294967040 }
  0x1a   :  { %38 = vsyncpa [#allocation3], 1 }
  0x1b   :  { %39 = vsyncpa [#allocation4], 1 }

</bundles_post_ra>
